<compile_context>
chip_gen: v6e
topology: v6e:2x2x1
jax: 0.10.0
libtpu: 0.0.40
codegen_flags: <defaults>
</compile_context>

<pallas_src>
import functools
import math

import jax
import jax.numpy as jnp
from jax.experimental import pallas as pl
from jax.experimental.pallas import tpu as pltpu

_BN_EPS = 1e-5


def linear_relu_kernel(x_ref,
                       s1_ref, b1_ref, w1_ref,
                       b2_ref, w2_ref,
                       b3_ref, w3_ref,
                       o_ref):
    """Fused forward of the whole LinearReluLayer stack on one batch tile.

    x_ref is bf16, BN vectors are f32, weights are bf16 with the *next* block's
    BN scale pre-folded into their columns.  All matmuls accumulate in f32.
    """
    # --- block 1: BN1 (full affine) -> ReLU -> Linear1 (BN2 scale pre-folded) ---
    h = jnp.maximum(x_ref[...] * s1_ref[...] + b1_ref[...], 0.0)   # bf16*f32 -> f32
    h = jnp.dot(h.astype(jnp.bfloat16), w1_ref[...],
                preferred_element_type=jnp.float32)

    # --- block 2: BN2 (shift only) -> ReLU -> Linear2 (BN3 scale pre-folded) ---
    h = jnp.maximum(h + b2_ref[...], 0.0)
    h = jnp.dot(h.astype(jnp.bfloat16), w2_ref[...],
                preferred_element_type=jnp.float32)

    # --- block 3: BN3 (shift only) -> ReLU -> Dropout(eval=identity) -> Linear3 ---
    h = jnp.maximum(h + b3_ref[...], 0.0)
    # TODO(synk): training-mode dropout (pltpu.prng_seed + prng_random_bits mask)
    #             intentionally omitted; eval-mode dropout is the identity.
    h = jnp.dot(h.astype(jnp.bfloat16), w3_ref[...],
                preferred_element_type=jnp.float32)

    o_ref[...] = h.astype(o_ref.dtype)


def _fold_params(bn_params, weights, eps=_BN_EPS):
    """Fold inference BN into per-feature affines; fold BN2/BN3 scales into W1/W2.

    (h @ W) * s  ==  h @ (W * s[None, :])  exactly, so the scale fold is lossless
    (done at f32 before the bf16 cast); only the shifts must remain as separate
    bias adds because the ReLU sits in between.
    Returns (s1, b1, W1', b2, W2', b3, W3) with weights cast to bf16.
    """
    H = weights[0].shape[0]
    scales, shifts = [], []
    for p in bn_params:
        scale = p["gamma"] / jnp.sqrt(p["var"] + eps)
        shift = p["beta"] - p["mean"] * scale
        scales.append(scale.astype(jnp.float32))
        shifts.append(shift.astype(jnp.float32))

    w1 = (weights[0].astype(jnp.float32) * scales[1][None, :]).astype(jnp.bfloat16)
    w2 = (weights[1].astype(jnp.float32) * scales[2][None, :]).astype(jnp.bfloat16)
    w3 = weights[2].astype(jnp.bfloat16)
    return (scales[0].reshape(1, H), shifts[0].reshape(1, H), w1,
            shifts[1].reshape(1, H), w2,
            shifts[2].reshape(1, H), w3)


@functools.partial(jax.jit, static_argnames=("batch_tile",))
def linear_relu_layer(x, bn_params, weights, batch_tile=256):
    """
    x:         (N, H) float32
    bn_params: list of 3 dicts with 'gamma','beta','mean','var', each (H,)
    weights:   list of 3 arrays, each (H, H) already laid out as (in, out)
    """
    N, H = x.shape
    s1, b1, w1, b2, w2, b3, w3 = _fold_params(bn_params, weights)
    x_bf16 = x.astype(jnp.bfloat16)

    # Batch tile: 256 (multiple of 8/16 sublanes, fills MXU M on v6e/v7x); if the
    # batch is smaller, use the full batch (block == full dim is always legal).
    bt = min(batch_tile, N)
    grid = (pl.cdiv(N, bt),)

    x_spec = pl.BlockSpec((bt, H), lambda i: (i, 0))
    out_spec = pl.BlockSpec((bt, H), lambda i: (i, 0))
    vec_spec = pl.BlockSpec((1, H), lambda i: (0, 0))
    # TODO(synk): at realistic H (>=2048) K/N-tile the weights with an f32 VMEM
    # accumulator ('arbitrary' reduction axis + pl.when init/finalize) and
    # single-buffer the constant-index blocks (pipeline_mode=pl.Buffered(1)) so
    # the kernel fits v7x's 64 MiB VMEM; at H=32 full-weight blocks are fine.
    w_spec = pl.BlockSpec((H, H), lambda i: (0, 0))

    bytes_accessed = (x_bf16.size * 2                       # bf16 input
                      + (w1.size + w2.size + w3.size) * 2   # bf16 weights
                      + (s1.size + b1.size + b2.size + b3.size) * 4
                      + N * H * 4)                          # f32 output
    cost = pl.CostEstimate(flops=3 * 2 * N * H * H,
                           transcendentals=0,
                           bytes_accessed=bytes_accessed)

    return pl.pallas_call(
        linear_relu_kernel,
        out_shape=jax.ShapeDtypeStruct((N, H), jnp.float32),
        grid_spec=pltpu.PrefetchScalarGridSpec(
            num_scalar_prefetch=0,
            grid=grid,
            in_specs=[x_spec,
                      vec_spec, vec_spec, w_spec,   # BN1 scale/shift, W1*s2
                      vec_spec, w_spec,             # BN2 shift,       W2*s3
                      vec_spec, w_spec],            # BN3 shift,       W3
            out_specs=out_spec),
        compiler_params=pltpu.CompilerParams(
            dimension_semantics=("parallel",),
            vmem_limit_bytes=32 * 1024 * 1024),
        cost_estimate=cost,
    )(x_bf16, s1, b1, w1, b2, w2, b3, w3)


def _reference_f32(x, bn_params, weights, eps=_BN_EPS):
    """Pure-JAX f32 reference of the module forward (eval mode; dropout=identity)."""
    h = x
    for i in range(3):
        p = bn_params[i]
        scale = p["gamma"] / jnp.sqrt(p["var"] + eps)
        shift = p["beta"] - p["mean"] * scale
        h = jnp.maximum(h * scale[None, :] + shift[None, :], 0.0)
        h = h @ weights[i]
    return h


def _reference_quantized(x, bn_params, weights):
    """Pure-JAX reference mirroring the kernel's bf16 quantization exactly."""
    s1, b1, w1, b2, w2, b3, w3 = _fold_params(bn_params, weights)
    h = jnp.maximum(x.astype(jnp.bfloat16) * s1 + b1, 0.0)
    h = jnp.dot(h.astype(jnp.bfloat16), w1, preferred_element_type=jnp.float32)
    h = jnp.maximum(h + b2, 0.0)
    h = jnp.dot(h.astype(jnp.bfloat16), w2, preferred_element_type=jnp.float32)
    h = jnp.maximum(h + b3, 0.0)
    h = jnp.dot(h.astype(jnp.bfloat16), w3, preferred_element_type=jnp.float32)
    return h


if __name__ == "__main__":
    hidden_size = 32
    batch = 512          # 2 grid steps at batch_tile=256 -> both v7x TCs get work

    key = jax.random.PRNGKey(0)
    keys = jax.random.split(key, 16)

    x = jax.random.normal(keys[0], (batch, hidden_size), dtype=jnp.float32)

    # Deterministic synthetic parameters (shapes per the module __init__).
    bn_params, weights = [], []
    k_i = 1
    for _ in range(3):
        bn_params.append({
            "gamma": 1.0 + 0.1 * jax.random.normal(keys[k_i], (hidden_size,), jnp.float32),
            "beta": 0.1 * jax.random.normal(keys[k_i + 1], (hidden_size,), jnp.float32),
            "mean": 0.05 * jax.random.normal(keys[k_i + 2], (hidden_size,), jnp.float32),
            "var": 1.0 + 0.1 * jax.random.uniform(keys[k_i + 3], (hidden_size,), jnp.float32),
        })
        k_i += 4
        # nn.Linear(hidden, hidden, bias=False) weight is (out, in); store it
        # pre-transposed as (in, out) so the kernel computes x @ W.
        w_out_in = jax.random.uniform(
            keys[k_i], (hidden_size, hidden_size), jnp.float32,
            minval=-1.0 / math.sqrt(hidden_size), maxval=1.0 / math.sqrt(hidden_size))
        weights.append(w_out_in.T)
        k_i += 1

    out = linear_relu_layer(x, bn_params, weights)
    out = jax.block_until_ready(out)
    assert out.shape == (batch, hidden_size)

    # Strict check vs a pure-JAX reference that mirrors the kernel's bf16 matmuls.
    ref_q = _reference_quantized(x, bn_params, weights)
    assert jnp.allclose(out, ref_q, atol=1e-3, rtol=1e-3), "mismatch vs quantized reference"

    # Looser check vs the exact f32 module semantics (bf16 quantization error only).
    ref = _reference_f32(x, bn_params, weights)
    assert jnp.allclose(out, ref, atol=5e-2, rtol=5e-2), "mismatch vs f32 reference"

    print("KERNEL_OK")
</pallas_src>

<mosaic_0001>
module attributes {stable_mosaic.version = 11 : i64} {
  func.func @linear_relu_kernel(%arg0: i32, %arg1: memref<256x32xbf16, #tpu.memory_space<vmem>>, %arg2: memref<1x32xf32, #tpu.memory_space<vmem>>, %arg3: memref<1x32xf32, #tpu.memory_space<vmem>>, %arg4: memref<32x32xbf16, #tpu.memory_space<vmem>>, %arg5: memref<1x32xf32, #tpu.memory_space<vmem>>, %arg6: memref<32x32xbf16, #tpu.memory_space<vmem>>, %arg7: memref<1x32xf32, #tpu.memory_space<vmem>>, %arg8: memref<32x32xbf16, #tpu.memory_space<vmem>>, %arg9: memref<256x32xf32, #tpu.memory_space<vmem>>) attributes {dimension_semantics = [#tpu.dimension_semantics<parallel>], iteration_bounds = array<i64: 2>, scalar_prefetch = 0 : i64, scratch_operands = 0 : i64, tpu.core_type = #tpu.core_type<tc>, window_params = [{transform_indices = @transform_0, window_bounds = array<i64: 256, 32>}, {pipeline_mode = #tpu.pipeline_mode<synchronous>, transform_indices = @transform_1, window_bounds = array<i64: 1, 32>}, {pipeline_mode = #tpu.pipeline_mode<synchronous>, transform_indices = @transform_2, window_bounds = array<i64: 1, 32>}, {pipeline_mode = #tpu.pipeline_mode<synchronous>, transform_indices = @transform_3, window_bounds = array<i64: 32, 32>}, {pipeline_mode = #tpu.pipeline_mode<synchronous>, transform_indices = @transform_4, window_bounds = array<i64: 1, 32>}, {pipeline_mode = #tpu.pipeline_mode<synchronous>, transform_indices = @transform_5, window_bounds = array<i64: 32, 32>}, {pipeline_mode = #tpu.pipeline_mode<synchronous>, transform_indices = @transform_6, window_bounds = array<i64: 1, 32>}, {pipeline_mode = #tpu.pipeline_mode<synchronous>, transform_indices = @transform_7, window_bounds = array<i64: 32, 32>}, {transform_indices = @transform_8, window_bounds = array<i64: 256, 32>}]} {
    %c0 = arith.constant 0 : index
    %c0_0 = arith.constant 0 : index
    %0 = vector.load %arg1[%c0, %c0_0] : memref<256x32xbf16, #tpu.memory_space<vmem>>, vector<256x32xbf16>
    %c0_1 = arith.constant 0 : index
    %c0_2 = arith.constant 0 : index
    %1 = vector.load %arg2[%c0_1, %c0_2] : memref<1x32xf32, #tpu.memory_space<vmem>>, vector<1x32xf32>
    %2 = arith.extf %0 : vector<256x32xbf16> to vector<256x32xf32>
    %3 = vector.broadcast %1 : vector<1x32xf32> to vector<256x32xf32>
    %4 = arith.mulf %2, %3 : vector<256x32xf32>
    %c0_3 = arith.constant 0 : index
    %c0_4 = arith.constant 0 : index
    %5 = vector.load %arg3[%c0_3, %c0_4] : memref<1x32xf32, #tpu.memory_space<vmem>>, vector<1x32xf32>
    %6 = vector.broadcast %5 : vector<1x32xf32> to vector<256x32xf32>
    %7 = arith.addf %4, %6 : vector<256x32xf32>
    %cst = arith.constant 0.000000e+00 : f32
    %8 = vector.broadcast %cst : f32 to vector<256x32xf32>
    %9 = arith.maximumf %7, %8 : vector<256x32xf32>
    %10 = arith.truncf %9 : vector<256x32xf32> to vector<256x32xbf16>
    %c0_5 = arith.constant 0 : index
    %c0_6 = arith.constant 0 : index
    %11 = vector.load %arg4[%c0_5, %c0_6] : memref<32x32xbf16, #tpu.memory_space<vmem>>, vector<32x32xbf16>
    %cst_7 = arith.constant dense<0.000000e+00> : vector<256x32xf32>
    %12 = tpu.matmul %10, %11, %cst_7 {dimension_numbers = #tpu.dot_dimension_numbers<[1], [0], [0], [1], [0, 0, 1, 1], [], []>} : vector<256x32xbf16>, vector<32x32xbf16>, vector<256x32xf32> -> vector<256x32xf32>
    %c0_8 = arith.constant 0 : index
    %c0_9 = arith.constant 0 : index
    %13 = vector.load %arg5[%c0_8, %c0_9] : memref<1x32xf32, #tpu.memory_space<vmem>>, vector<1x32xf32>
    %14 = vector.broadcast %13 : vector<1x32xf32> to vector<256x32xf32>
    %15 = arith.addf %12, %14 : vector<256x32xf32>
    %cst_10 = arith.constant 0.000000e+00 : f32
    %16 = vector.broadcast %cst_10 : f32 to vector<256x32xf32>
    %17 = arith.maximumf %15, %16 : vector<256x32xf32>
    %18 = arith.truncf %17 : vector<256x32xf32> to vector<256x32xbf16>
    %c0_11 = arith.constant 0 : index
    %c0_12 = arith.constant 0 : index
    %19 = vector.load %arg6[%c0_11, %c0_12] : memref<32x32xbf16, #tpu.memory_space<vmem>>, vector<32x32xbf16>
    %cst_13 = arith.constant dense<0.000000e+00> : vector<256x32xf32>
    %20 = tpu.matmul %18, %19, %cst_13 {dimension_numbers = #tpu.dot_dimension_numbers<[1], [0], [0], [1], [0, 0, 1, 1], [], []>} : vector<256x32xbf16>, vector<32x32xbf16>, vector<256x32xf32> -> vector<256x32xf32>
    %c0_14 = arith.constant 0 : index
    %c0_15 = arith.constant 0 : index
    %21 = vector.load %arg7[%c0_14, %c0_15] : memref<1x32xf32, #tpu.memory_space<vmem>>, vector<1x32xf32>
    %22 = vector.broadcast %21 : vector<1x32xf32> to vector<256x32xf32>
    %23 = arith.addf %20, %22 : vector<256x32xf32>
    %cst_16 = arith.constant 0.000000e+00 : f32
    %24 = vector.broadcast %cst_16 : f32 to vector<256x32xf32>
    %25 = arith.maximumf %23, %24 : vector<256x32xf32>
    %26 = arith.truncf %25 : vector<256x32xf32> to vector<256x32xbf16>
    %c0_17 = arith.constant 0 : index
    %c0_18 = arith.constant 0 : index
    %27 = vector.load %arg8[%c0_17, %c0_18] : memref<32x32xbf16, #tpu.memory_space<vmem>>, vector<32x32xbf16>
    %cst_19 = arith.constant dense<0.000000e+00> : vector<256x32xf32>
    %28 = tpu.matmul %26, %27, %cst_19 {dimension_numbers = #tpu.dot_dimension_numbers<[1], [0], [0], [1], [0, 0, 1, 1], [], []>} : vector<256x32xbf16>, vector<32x32xbf16>, vector<256x32xf32> -> vector<256x32xf32>
    %c0_20 = arith.constant 0 : index
    %c0_21 = arith.constant 0 : index
    %29 = vector.load %arg9[%c0_20, %c0_21] : memref<256x32xf32, #tpu.memory_space<vmem>>, vector<256x32xf32>
    tpu.vector_store %arg9[%c0_20, %c0_21], %28 {strides = array<i32>} : memref<256x32xf32, #tpu.memory_space<vmem>>, vector<256x32xf32>,
    return
  }
  func.func @transform_0(%arg0: i32) -> (i32, i32) {
    %c0_i32 = arith.constant 0 : i32
    %c0_i32_0 = arith.constant 0 : i32
    return %arg0, %c0_i32 : i32, i32
  }
  func.func @transform_1(%arg0: i32) -> (i32, i32) {
    %c0_i32 = arith.constant 0 : i32
    %c0_i32_0 = arith.constant 0 : i32
    %c0_i32_1 = arith.constant 0 : i32
    return %c0_i32, %c0_i32_0 : i32, i32
  }
  func.func @transform_2(%arg0: i32) -> (i32, i32) {
    %c0_i32 = arith.constant 0 : i32
    %c0_i32_0 = arith.constant 0 : i32
    %c0_i32_1 = arith.constant 0 : i32
    return %c0_i32, %c0_i32_0 : i32, i32
  }
  func.func @transform_3(%arg0: i32) -> (i32, i32) {
    %c0_i32 = arith.constant 0 : i32
    %c0_i32_0 = arith.constant 0 : i32
    %c0_i32_1 = arith.constant 0 : i32
    return %c0_i32, %c0_i32_0 : i32, i32
  }
  func.func @transform_4(%arg0: i32) -> (i32, i32) {
    %c0_i32 = arith.constant 0 : i32
    %c0_i32_0 = arith.constant 0 : i32
    %c0_i32_1 = arith.constant 0 : i32
    return %c0_i32, %c0_i32_0 : i32, i32
  }
  func.func @transform_5(%arg0: i32) -> (i32, i32) {
    %c0_i32 = arith.constant 0 : i32
    %c0_i32_0 = arith.constant 0 : i32
    %c0_i32_1 = arith.constant 0 : i32
    return %c0_i32, %c0_i32_0 : i32, i32
  }
  func.func @transform_6(%arg0: i32) -> (i32, i32) {
    %c0_i32 = arith.constant 0 : i32
    %c0_i32_0 = arith.constant 0 : i32
    %c0_i32_1 = arith.constant 0 : i32
    return %c0_i32, %c0_i32_0 : i32, i32
  }
  func.func @transform_7(%arg0: i32) -> (i32, i32) {
    %c0_i32 = arith.constant 0 : i32
    %c0_i32_0 = arith.constant 0 : i32
    %c0_i32_1 = arith.constant 0 : i32
    return %c0_i32, %c0_i32_0 : i32, i32
  }
  func.func @transform_8(%arg0: i32) -> (i32, i32) {
    %c0_i32 = arith.constant 0 : i32
    %c0_i32_0 = arith.constant 0 : i32
    return %arg0, %c0_i32 : i32, i32
  }
}

</mosaic_0001>

<bundles_post_ra>
// kernel: linear_relu_layer.1
= control target key start
LH: loop header
LB: loop body
LE: loop exit
PB: predicated region body
PF: predicated region fallthrough
CT: control target
= control target key end

     0   :  { %s1755_s27 = smov 0   ;;  %s2088_s0 = inlined_call_operand.vmem [shape: bf16[512,32], index: 0, kind: input, shape index: {}]   ;;  %s2089_s1 = inlined_call_operand.vmem [shape: f32[1,32], index: 1, kind: input, shape index: {}]   ;;  %s2090_s2 = inlined_call_operand.vmem [shape: f32[1,32], index: 2, kind: input, shape index: {}]   ;;  %s2091_s3 = inlined_call_operand.vmem [shape: bf16[32,32], index: 3, kind: input, shape index: {}]   ;;  %s2092_s4 = inlined_call_operand.vmem [shape: f32[1,32], index: 4, kind: input, shape index: {}]   ;;  %s2093_s5 = inlined_call_operand.vmem [shape: bf16[32,32], index: 5, kind: input, shape index: {}]   ;;  %s2094_s6 = inlined_call_operand.vmem [shape: f32[1,32], index: 6, kind: input, shape index: {}]   ;;  %s2095_s7 = inlined_call_operand.vmem [shape: bf16[32,32], index: 7, kind: input, shape index: {}]   ;;  %s2096_s8 = inlined_call_operand.vmem [shape: f32[512,32], index: 8, kind: output, shape index: {}]  }
   0x1 LB: > { %s1374_s28 = sadd.s32 4294967295, %s1708_s27   ;;  %p1378_p0 = scmp.ge.s32.totalorder %s1708_s27, 1  ;;  %s1708_s27 = sphi %s1755_s27, %s18_s27  }
   0x2   : > { %p263_p1 = scmp.lt.s32.totalorder %s1708_s27, 3 }
   0x4   : > { %p264_p2 = pnand %p1378_p0, %p263_p1 }
   0x5   : > { %s1379_s9 = sshll.u32 (!%p264_p2), %s1374_s28, 5 }
   0x6   : > { %267 = sbr.rel (%p264_p2) target bundleno = 694 (0x2b6), region = 52  ;;  %p298_p3 = scmp.lt.s32.totalorder (!%p264_p2), %s1379_s9, 63 }
   0xb   : > { %v1696_v0 = vld [vmem:[%s2091_s3 + $0x8] sm:$0xff]   ;;  %v1697_v1 = vld [vmem:[%s2091_s3] sm:$0xff]   ;;  %s2098_s9 = smov (!%p298_p3, %s1379_s9), 63  ;;  %vm523_vm0 = vcmask 261120  }
   0xc   : > { %1576 = vmatprep.subr.bf16.mxu0 %v1696_v0  ;;  %1684 = vmatprep.subr.bf16.mxu1 %v1696_v0  ;;  %v1774_v2 = vld [vmem:[%s2093_s5 + $0x8] sm:$0xff]   ;;  %s1380_s14 = sshll.u32 %s2098_s9, 2  ;;  %v1785_v3 = vld [vmem:[%s2089_s1] ss:$0 sm:$0xff]  ;;  %s1382_s12 = sshll.u32 %s2098_s9, 3 }
   0xd   : > { %1577 = vmatpush3.bf16.msra.mxu0 %v1696_v0  ;;  %1686 = vmatpush3.bf16.msra.mxu1 %v1696_v0  ;;  %s1780_s17 = scalar_lea.vmem %s2088_s0, %s1380_s14  ;;  %v1795_v12 = vld [vmem:[%s2090_s2] ss:$0 sm:$0xff]  ;;  %s2019_s15 = scalar_lea.vmem %s2096_s8, %s1382_s12 }
   0xe   : > { %1578 = vmatprep.subr.bf16.mxu0 %v1697_v1  ;;  %1685 = vmatprep.subr.bf16.mxu1 %v1697_v1  ;;  %v1444_v4 = vld [vmem:[%s1780_s17] sm:$0xff]   ;;  %v1507_v5 = vld [vmem:[%s1780_s17 + $0x8] sm:$0xff]   ;;  %v1508_v6 = vld [vmem:[%s1780_s17 + $0x10] sm:$0xff]  }
   0xf   : > { %v1445_v7 = vunpack.c.l.bf16 %v1444_v4  ;;  %v1446_v8 = vunpack.c.h.bf16 %v1444_v4  ;;  %v1449_v9 = vunpack.c.l.bf16 %v1507_v5  ;;  %v1450_v10 = vunpack.c.h.bf16 %v1507_v5  ;;  %v1509_v11 = vld [vmem:[%s1780_s17 + $0x18] sm:$0xff]   ;;  %v1510_v33 = vld [vmem:[%s1780_s17 + $0x20] sm:$0xff]   ;;  %v1511_v38 = vld [vmem:[%s1780_s17 + $0x28] sm:$0xff]  }
  0x10   : > { %v1453_v13 = vunpack.c.l.bf16 %v1508_v6  ;;  %v1454_v14 = vunpack.c.h.bf16 %v1508_v6  ;;  %v1457_v15 = vunpack.c.l.bf16 %v1509_v11  ;;  %v1458_v16 = vunpack.c.h.bf16 %v1509_v11  ;;  %v1512_v43 = vld [vmem:[%s1780_s17 + $0x30] sm:$0xff]   ;;  %v1513_v48 = vld [vmem:[%s1780_s17 + $0x38] sm:$0xff]  }
  0x11   : > { %1579 = vmatpush3.bf16.msra.mxu0 %v1697_v1  ;;  %1687 = vmatpush3.bf16.msra.mxu1 %v1697_v1  ;;  %v381_v17 = vmul.f32 %v1445_v7, %v1785_v3  ;;  %v382_v18 = vmul.f32 %v1446_v8, %v1785_v3  ;;  %v383_v19 = vmul.f32 %v1449_v9, %v1785_v3  ;;  %v1461_v46 = vunpack.c.l.bf16 %v1510_v33  ;;  %v1514_v7 = vld [vmem:[%s1780_s17 + $0x40] sm:$0xff]  }
  0x12   : > { %1612 = vmatprep.subr.bf16.mxu1 %v1774_v2  ;;  %v384_v20 = vmul.f32 %v1450_v10, %v1785_v3  ;;  %v385_v21 = vmul.f32 %v1453_v13, %v1785_v3  ;;  %v386_v22 = vmul.f32 %v1454_v14, %v1785_v3  ;;  %v387_v23 = vmul.f32 %v1457_v15, %v1785_v3 }
  0x13   : > { %v388_v24 = vmul.f32 %v1458_v16, %v1785_v3  ;;  %v420_v25 = vadd.f32 %v1795_v12, %v381_v17  ;;  %v421_v26 = vadd.f32 %v1795_v12, %v382_v18  ;;  %v422_v27 = vadd.f32 %v1795_v12, %v383_v19  ;;  %v1515_v17 = vld [vmem:[%s1780_s17 + $0x48] sm:$0xff]  }
  0x14   : > { %v423_v28 = vadd.f32 %v1795_v12, %v384_v20  ;;  %v424_v29 = vadd.f32 %v1795_v12, %v385_v21  ;;  %v425_v30 = vadd.f32 %v1795_v12, %v386_v22  ;;  %v426_v31 = vadd.f32 %v1795_v12, %v387_v23  ;;  %v1516_v22 = vld [vmem:[%s1780_s17 + $0x50] sm:$0xff]  }
  0x15   : > { %v427_v32 = vadd.f32 %v1795_v12, %v388_v24  ;;  %v452_v34 = vmax.f32 %v420_v25, 0.0  ;;  %v453_v35 = vmax.f32 %v421_v26, 0.0  ;;  %v454_v36 = vmax.f32 %v422_v27, 0.0  ;;  %v1517_v26 = vld [vmem:[%s1780_s17 + $0x58] sm:$0xff]  }
  0x16   : > { %v455_v37 = vmax.f32 %v423_v28, 0.0  ;;  %v456_v39 = vmax.f32 %v424_v29, 0.0  ;;  %v457_v40 = vmax.f32 %v425_v30, 0.0  ;;  %v458_v41 = vmax.f32 %v426_v31, 0.0 }
  0x17   : > { %v459_v42 = vmax.f32 %v427_v32, 0.0  ;;  %v484_v44 = vpack.c.bf16 %v453_v35, %v452_v34  ;;  %v1462_v47 = vunpack.c.h.bf16 %v1510_v33  ;;  %v1465_v51 = vunpack.c.l.bf16 %v1511_v38 }
  0x18   : > { %v485_v45 = vpack.c.bf16 %v455_v37, %v454_v36  ;;  %v486_v49 = vpack.c.bf16 %v457_v40, %v456_v39  ;;  %v1466_v52 = vunpack.c.h.bf16 %v1511_v38  ;;  %v389_v53 = vmul.f32 %v1461_v46, %v1785_v3 }
  0x19   : > { %v487_v50 = vpack.c.bf16 %v459_v42, %v458_v41  ;;  %1580 = vmatprep.mubr.msk.bf16.mxu0 %vm523_vm0, %v484_v44  ;;  %v390_v54 = vmul.f32 %v1462_v47, %v1785_v3  ;;  %v1469_v55 = vunpack.c.l.bf16 %v1512_v43  ;;  %v1470_v56 = vunpack.c.h.bf16 %v1512_v43  ;;  %v1518_v43 = vld [vmem:[%s1780_s17 + $0x60] sm:$0xff]  }
  0x1a   : > { %1581 = vmatmul.mubr.msk.bf16.vlgmr.msra.gmra.mxu0 %vm523_vm0, %v485_v45  ;;  %v391_v57 = vmul.f32 %v1465_v51, %v1785_v3  ;;  %v392_v58 = vmul.f32 %v1466_v52, %v1785_v3  ;;  %v1473_v59 = vunpack.c.l.bf16 %v1513_v48  ;;  %v1474_v60 = vunpack.c.h.bf16 %v1513_v48 }
  0x1b   : > { %1584 = vmatprep.mubr.msk.bf16.mxu0 %vm523_vm0, %v486_v49  ;;  %v428_v61 = vadd.f32 %v1795_v12, %v389_v53  ;;  %v429_v62 = vadd.f32 %v1795_v12, %v390_v54  ;;  %v393_v63 = vmul.f32 %v1469_v55, %v1785_v3  ;;  %v394_v0 = vmul.f32 %v1470_v56, %v1785_v3  ;;  %v1519_v56 = vld [vmem:[%s1780_s17 + $0x68] sm:$0xff]  }
  0x1c   : > { %v430_v1 = vadd.f32 %v1795_v12, %v391_v57  ;;  %v431_v4 = vadd.f32 %v1795_v12, %v392_v58  ;;  %v395_v5 = vmul.f32 %v1473_v59, %v1785_v3  ;;  %v396_v6 = vmul.f32 %v1474_v60, %v1785_v3 }
  0x1d   : > { %v460_v8 = vmax.f32 %v428_v61, 0.0  ;;  %v461_v9 = vmax.f32 %v429_v62, 0.0  ;;  %v432_v10 = vadd.f32 %v1795_v12, %v393_v63  ;;  %v433_v11 = vadd.f32 %v1795_v12, %v394_v0  ;;  %v1520_v61 = vld [vmem:[%s1780_s17 + $0x70] sm:$0xff]  }
  0x1e   : > { %v462_v13 = vmax.f32 %v430_v1, 0.0  ;;  %v463_v14 = vmax.f32 %v431_v4, 0.0  ;;  %v1836_v15 = vadd.f32 %v1795_v12, %v395_v5  ;;  %v1839_v16 = vadd.f32 %v1795_v12, %v396_v6  ;;  %v1699_v4 = vld [vmem:[%s2093_s5] sm:$0xff]  }
  0x1f   : > { %v488_v18 = vpack.c.bf16 %v461_v9, %v460_v8  ;;  %v464_v19 = vmax.f32 %v432_v10, 0.0  ;;  %v465_v20 = vmax.f32 %v433_v11, 0.0  ;;  %v1477_v21 = vunpack.c.l.bf16 %v1514_v7 }
  0x20   : > { %v489_v23 = vpack.c.bf16 %v463_v14, %v462_v13  ;;  %v466_v24 = vmax.f32 %v1836_v15, 0.0  ;;  %v1478_v25 = vunpack.c.h.bf16 %v1514_v7  ;;  %v467_v27 = vmax.f32 %v1839_v16, 0.0  ;;  %v1521_v14 = vld [vmem:[%s1780_s17 + $0x78] sm:$0xff]  }
  0x21   : > { %v397_v28 = vmul.f32 %v1477_v21, %v1785_v3  ;;  %v1481_v29 = vunpack.c.l.bf16 %v1515_v17  ;;  %v1482_v30 = vunpack.c.h.bf16 %v1515_v17  ;;  %v490_v31 = vpack.c.bf16 %v465_v20, %v464_v19 }
  0x22   : > { %1585 = vmatmul.mubr.msk.bf16.gmra.mxu0 %vm523_vm0, %v487_v50  ;;  %v398_v32 = vmul.f32 %v1478_v25, %v1785_v3  ;;  %v1485_v33 = vunpack.c.l.bf16 %v1516_v22  ;;  %v1486_v34 = vunpack.c.h.bf16 %v1516_v22  ;;  %v1489_v38 = vunpack.c.l.bf16 %v1517_v26 }
  0x23   : > { %1588 = vmatprep.mubr.msk.bf16.mxu0 %vm523_vm0, %v488_v18  ;;  %v436_v35 = vadd.f32 %v1795_v12, %v397_v28  ;;  %v399_v36 = vmul.f32 %v1481_v29, %v1785_v3  ;;  %v400_v37 = vmul.f32 %v1482_v30, %v1785_v3  ;;  %v1490_v42 = vunpack.c.h.bf16 %v1517_v26 }
  0x24   : > { %v437_v39 = vadd.f32 %v1795_v12, %v398_v32  ;;  %v401_v40 = vmul.f32 %v1485_v33, %v1785_v3  ;;  %v402_v41 = vmul.f32 %v1486_v34, %v1785_v3  ;;  %v403_v47 = vmul.f32 %v1489_v38, %v1785_v3 }
  0x25   : > { %v468_v44 = vmax.f32 %v436_v35, 0.0  ;;  %v438_v45 = vadd.f32 %v1795_v12, %v399_v36  ;;  %v439_v46 = vadd.f32 %v1795_v12, %v400_v37  ;;  %v404_v51 = vmul.f32 %v1490_v42, %v1785_v3 }
  0x26   : > { %v469_v48 = vmax.f32 %v437_v39, 0.0  ;;  %v440_v49 = vadd.f32 %v1795_v12, %v401_v40  ;;  %v441_v50 = vadd.f32 %v1795_v12, %v402_v41  ;;  %v442_v54 = vadd.f32 %v1795_v12, %v403_v47 }
  0x27   : > { %v470_v52 = vmax.f32 %v438_v45, 0.0  ;;  %v471_v53 = vmax.f32 %v439_v46, 0.0  ;;  %v1493_v55 = vunpack.c.l.bf16 %v1518_v43  ;;  %v443_v60 = vadd.f32 %v1795_v12, %v404_v51  ;;  %v1912_v45 = vld [vmem:[%s2092_s4] ss:$0 sm:$0xff] }
  0x28   : > { %v492_v57 = vpack.c.bf16 %v469_v48, %v468_v44  ;;  %v472_v58 = vmax.f32 %v440_v49, 0.0  ;;  %v473_v59 = vmax.f32 %v441_v50, 0.0  ;;  %v474_v63 = vmax.f32 %v442_v54, 0.0 }
  0x29   : > { %v493_v62 = vpack.c.bf16 %v471_v53, %v470_v52  ;;  %v1494_v0 = vunpack.c.h.bf16 %v1518_v43  ;;  %v405_v1 = vmul.f32 %v1493_v55, %v1785_v3  ;;  %v475_v6 = vmax.f32 %v443_v60, 0.0  ;;  %v1701_v43 = vld [vmem:[%s2095_s7] sm:$0xff]  }
  0x2a   : > { %1589 = vmatmul.mubr.msk.bf16.gmra.mxu0 %vm523_vm0, %v489_v23  ;;  %1596 = vmatprep.mubr.msk.bf16.mxu1 %vm523_vm0, %v492_v57  ;;  %v494_v5 = vpack.c.bf16 %v473_v59, %v472_v58  ;;  %v1497_v7 = vunpack.c.l.bf16 %v1519_v56  ;;  %v1498_v8 = vunpack.c.h.bf16 %v1519_v56  ;;  %v1501_v11 = vunpack.c.l.bf16 %v1520_v61 }
  0x2b   : > { %1592 = vmatprep.mubr.msk.bf16.mxu0 %vm523_vm0, %v490_v31  ;;  %1597 = vmatmul.mubr.msk.bf16.vlgmr.msra.gmra.mxu1 %vm523_vm0, %v493_v62  ;;  %v406_v9 = vmul.f32 %v1494_v0, %v1785_v3  ;;  %v444_v10 = vadd.f32 %v1795_v12, %v405_v1  ;;  %v1502_v13 = vunpack.c.h.bf16 %v1520_v61  ;;  %v491_v23 = vpack.c.bf16 %v467_v27, %v466_v24 }
  0x2c   : > { %1600 = vmatprep.mubr.msk.bf16.mxu1 %vm523_vm0, %v494_v5  ;;  %v407_v17 = vmul.f32 %v1497_v7, %v1785_v3  ;;  %v408_v18 = vmul.f32 %v1498_v8, %v1785_v3  ;;  %1613 = vmatpush3.bf16.msra.mxu1 %v1774_v2  ;;  %v409_v21 = vmul.f32 %v1501_v11, %v1785_v3  ;;  %v1505_v26 = vunpack.c.l.bf16 %v1521_v14 }
  0x2d   : > { %v445_v19 = vadd.f32 %v1795_v12, %v406_v9  ;;  %v476_v20 = vmax.f32 %v444_v10, 0.0  ;;  %v410_v22 = vmul.f32 %v1502_v13, %v1785_v3  ;;  %1614 = vmatprep.subr.bf16.mxu1 %v1699_v4  ;;  %v495_v25 = vpack.c.bf16 %v475_v6, %v474_v63 }
  0x2e   : > { %v446_v29 = vadd.f32 %v1795_v12, %v407_v17  ;;  %v447_v2 = vadd.f32 %v1795_v12, %v408_v18  ;;  %v1506_v30 = vunpack.c.h.bf16 %v1521_v14  ;;  %v448_v31 = vadd.f32 %v1795_v12, %v409_v21 }
  0x2f   : > { %v477_v28 = vmax.f32 %v445_v19, 0.0  ;;  %v449_v32 = vadd.f32 %v1795_v12, %v410_v22  ;;  %v411_v24 = vmul.f32 %v1505_v26, %v1785_v3 }
  0x30   : > { %1615 = vmatpush3.bf16.msra.mxu1 %v1699_v4  ;;  %v478_v15 = vmax.f32 %v446_v29, 0.0  ;;  %v479_v16 = vmax.f32 %v447_v2, 0.0  ;;  %v412_v27 = vmul.f32 %v1506_v30, %v1785_v3  ;;  %v480_v34 = vmax.f32 %v448_v31, 0.0  ;;  %v1700_v3 = vld [vmem:[%s2095_s7 + $0x8] sm:$0xff]  }
  0x31   : > { %v496_v33 = vpack.c.bf16 %v477_v28, %v476_v20  ;;  %v481_v35 = vmax.f32 %v449_v32, 0.0  ;;  %v450_v37 = vadd.f32 %v1795_v12, %v411_v24  ;;  %1648 = vmatprep.subr.bf16.mxu0 %v1700_v3 }
  0x32   : > { %1593 = vmatmul.mubr.msk.bf16.gmra.mxu0 %vm523_vm0, %v491_v23  ;;  %v497_v36 = vpack.c.bf16 %v479_v16, %v478_v15  ;;  %v451_v38 = vadd.f32 %v1795_v12, %v412_v27 }
  0x33   : > { %1601 = vmatmul.mubr.msk.bf16.gmra.mxu1 %vm523_vm0, %v495_v25  ;;  %v498_v39 = vpack.c.bf16 %v481_v35, %v480_v34  ;;  %v482_v40 = vmax.f32 %v450_v37, 0.0  ;;  %1649 = vmatpush3.bf16.msra.mxu0 %v1700_v3 }
  0x34   : > { %1604 = vmatprep.mubr.msk.bf16.mxu1 %vm523_vm0, %v496_v33  ;;  %v483_v41 = vmax.f32 %v451_v38, 0.0  ;;  %1650 = vmatprep.subr.bf16.mxu0 %v1701_v43 }
  0x36   : > { %v499_v42 = vpack.c.bf16 %v483_v41, %v482_v40 }
  0x37   : > { %1651 = vmatpush3.bf16.msra.mxu0 %v1701_v43 }
  0x3b   : > { %1605 = vmatmul.mubr.msk.bf16.gmra.mxu1 %vm523_vm0, %v497_v36 }
  0x3c   : > { %1608 = vmatprep.mubr.msk.bf16.mxu1 %vm523_vm0, %v498_v39 }
  0x43   : > { %1609 = vmatmul.mubr.msk.bf16.gmra.mxu1 %vm523_vm0, %v499_v42 }
  0xda   : > { %v1582_v12 = vpop.f32.mrf.mxu0 }
  0xdb   : > { %v615_v49 = vadd.f32 %v1582_v12, %v1912_v45 }
  0xdc   : > { %v606_v44 = vpop.f32.mrf.mxu0 }
  0xdd   : > { %v607_v47 = vadd.f32 %v1912_v45, %v606_v44  ;;  %v735_v56 = vmax.f32 %v615_v49, 0.0 }
  0xde   : > { %v1583_v46 = vpop.f32.mrf.mxu0 }
  0xdf   : > { %v618_v48 = vadd.f32 %v1583_v46, %v1912_v45  ;;  %v733_v54 = vmax.f32 %v607_v47, 0.0 }
  0xe0   : > { %v609_v50 = vpop.f32.mrf.mxu0 }
  0xe1   : > { %v610_v51 = vadd.f32 %v1912_v45, %v609_v50  ;;  %v736_v52 = vmax.f32 %v618_v48, 0.0 }
  0xe2   : > { %v1586_v53 = vpop.f32.mrf.mxu0 }
  0xe3   : > { %v734_v55 = vmax.f32 %v610_v51, 0.0  ;;  %v766_v59 = vpack.c.bf16 %v736_v52, %v735_v56  ;;  %v631_v63 = vadd.f32 %v1586_v53, %v1912_v45 }
  0xe4   : > { %v622_v57 = vpop.f32.mrf.mxu0 }
  0xe5   : > { %v765_v58 = vpack.c.bf16 %v734_v55, %v733_v54  ;;  %v623_v61 = vadd.f32 %v1912_v45, %v622_v57  ;;  %v739_v9 = vmax.f32 %v631_v63, 0.0 }
  0xe6   : > { %v1587_v60 = vpop.f32.mrf.mxu0 }
  0xe7   : > { %v634_v62 = vadd.f32 %v1587_v60, %v1912_v45  ;;  %1616 = vmatprep.mubr.msk.bf16.mxu1 %vm523_vm0, %v765_v58  ;;  %v737_v6 = vmax.f32 %v623_v61, 0.0 }
  0xe8   : > { %v625_v0 = vpop.f32.mrf.mxu0  ;;  %1617 = vmatmul.mubr.msk.bf16.vlgmr.msra.gmra.mxu1 %vm523_vm0, %v766_v59 }
  0xe9   : > { %v626_v1 = vadd.f32 %v1912_v45, %v625_v0  ;;  %v740_v4 = vmax.f32 %v634_v62, 0.0 }
  0xea   : > { %v1590_v5 = vpop.f32.mrf.mxu0 }
  0xeb   : > { %v738_v7 = vmax.f32 %v626_v1, 0.0  ;;  %v1598_v8 = vpop.f32.mrf.mxu1  ;;  %v768_v14 = vpack.c.bf16 %v740_v4, %v739_v9  ;;  %v647_v21 = vadd.f32 %v1590_v5, %v1912_v45 }
  0xec   : > { %v638_v10 = vpop.f32.mrf.mxu0  ;;  %v679_v53 = vadd.f32 %v1598_v8, %v1912_v45 }
  0xed   : > { %v767_v11 = vpack.c.bf16 %v738_v7, %v737_v6  ;;  %v670_v13 = vpop.f32.mrf.mxu1  ;;  %v639_v18 = vadd.f32 %v1912_v45, %v638_v10  ;;  %v743_v31 = vmax.f32 %v647_v21, 0.0 }
  0xee   : > { %v1591_v17 = vpop.f32.mrf.mxu0  ;;  %v671_v15 = vadd.f32 %v1912_v45, %v670_v13  ;;  %v751_v60 = vmax.f32 %v679_v53, 0.0 }
  0xef   : > { %v650_v19 = vadd.f32 %v1591_v17, %v1912_v45  ;;  %1620 = vmatprep.mubr.msk.bf16.mxu1 %vm523_vm0, %v767_v11  ;;  %v1599_v20 = vpop.f32.mrf.mxu1  ;;  %v741_v29 = vmax.f32 %v639_v18, 0.0 }
  0xf0   : > { %v641_v22 = vpop.f32.mrf.mxu0  ;;  %1621 = vmatmul.mubr.msk.bf16.gmra.mxu1 %vm523_vm0, %v768_v14  ;;  %v749_v40 = vmax.f32 %v671_v15, 0.0  ;;  %v682_v55 = vadd.f32 %v1599_v20, %v1912_v45 }
  0xf1   : > { %v642_v23 = vadd.f32 %v1912_v45, %v641_v22  ;;  %v673_v25 = vpop.f32.mrf.mxu1  ;;  %v744_v26 = vmax.f32 %v650_v19, 0.0 }
  0xf2   : > { %v1594_v28 = vpop.f32.mrf.mxu0  ;;  %v674_v16 = vadd.f32 %v1912_v45, %v673_v25  ;;  %v752_v61 = vmax.f32 %v682_v55, 0.0 }
  0xf3   : > { %v742_v2 = vmax.f32 %v642_v23, 0.0  ;;  %v1602_v30 = vpop.f32.mrf.mxu1  ;;  %v770_v27 = vpack.c.bf16 %v744_v26, %v743_v31  ;;  %v663_v38 = vadd.f32 %v1594_v28, %v1912_v45 }
  0xf4   : > { %v654_v32 = vpop.f32.mrf.mxu0  ;;  %v750_v42 = vmax.f32 %v674_v16, 0.0  ;;  %v774_v5 = vpack.c.bf16 %v752_v61, %v751_v60  ;;  %v695_v6 = vadd.f32 %v1602_v30, %v1912_v45 }
  0xf5   : > { %v769_v33 = vpack.c.bf16 %v742_v2, %v741_v29  ;;  %v686_v24 = vpop.f32.mrf.mxu1  ;;  %v655_v35 = vadd.f32 %v1912_v45, %v654_v32  ;;  %v747_v47 = vmax.f32 %v663_v38, 0.0 }
  0xf6   : > { %v1595_v34 = vpop.f32.mrf.mxu0  ;;  %v773_v49 = vpack.c.bf16 %v750_v42, %v749_v40  ;;  %v687_v50 = vadd.f32 %v1912_v45, %v686_v24  ;;  %v755_v11 = vmax.f32 %v695_v6, 0.0 }
  0xf7   : > { %v666_v36 = vadd.f32 %v1595_v34, %v1912_v45  ;;  %1624 = vmatprep.mubr.msk.bf16.mxu1 %vm523_vm0, %v769_v33  ;;  %v1603_v37 = vpop.f32.mrf.mxu1  ;;  %v745_v12 = vmax.f32 %v655_v35, 0.0 }
  0xf8   : > { %v657_v39 = vpop.f32.mrf.mxu0  ;;  %1625 = vmatmul.mubr.msk.bf16.gmra.mxu1 %vm523_vm0, %v770_v27  ;;  %v753_v57 = vmax.f32 %v687_v50, 0.0  ;;  %v698_v7 = vadd.f32 %v1603_v37, %v1912_v45  ;;  %v1965_v27 = vld [vmem:[%s2094_s6] ss:$0 sm:$0xff] }
  0xf9   : > { %v658_v41 = vadd.f32 %v1912_v45, %v657_v39  ;;  %v689_v3 = vpop.f32.mrf.mxu1  ;;  %v748_v43 = vmax.f32 %v666_v36, 0.0 }
  0xfa   : > { %v690_v51 = vadd.f32 %v1912_v45, %v689_v3  ;;  %v756_v13 = vmax.f32 %v698_v7, 0.0 }
  0xfb   : > { %v746_v44 = vmax.f32 %v658_v41, 0.0  ;;  %v1606_v46 = vpop.f32.mrf.mxu1  ;;  %v772_v54 = vpack.c.bf16 %v748_v43, %v747_v47 }
  0xfc   : > { %v754_v58 = vmax.f32 %v690_v51, 0.0  ;;  %v776_v20 = vpack.c.bf16 %v756_v13, %v755_v11  ;;  %v711_v21 = vadd.f32 %v1606_v46, %v1912_v45 }
  0xfd   : > { %v771_v48 = vpack.c.bf16 %v746_v44, %v745_v12  ;;  %v702_v52 = vpop.f32.mrf.mxu1 }
  0xfe   : > { %v775_v63 = vpack.c.bf16 %v754_v58, %v753_v57  ;;  %v703_v0 = vadd.f32 %v1912_v45, %v702_v52  ;;  %v759_v26 = vmax.f32 %v711_v21, 0.0 }
  0xff   : > { %1628 = vmatprep.mubr.msk.bf16.mxu1 %vm523_vm0, %v771_v48  ;;  %v1607_v56 = vpop.f32.mrf.mxu1 }
 0x100   : > { %1629 = vmatmul.mubr.msk.bf16.gmra.mxu1 %vm523_vm0, %v772_v54  ;;  %v757_v9 = vmax.f32 %v703_v0, 0.0  ;;  %v714_v22 = vadd.f32 %v1607_v56, %v1912_v45 }
 0x101   : > { %1632 = vmatprep.mubr.msk.bf16.mxu1 %vm523_vm0, %v773_v49  ;;  %v705_v59 = vpop.f32.mrf.mxu1 }
 0x102   : > { %v706_v1 = vadd.f32 %v1912_v45, %v705_v59  ;;  %v760_v28 = vmax.f32 %v714_v22, 0.0 }
 0x103   : > { %v1610_v62 = vpop.f32.mrf.mxu1 }
 0x104   : > { %v758_v10 = vmax.f32 %v706_v1, 0.0  ;;  %v778_v2 = vpack.c.bf16 %v760_v28, %v759_v26  ;;  %v727_v30 = vadd.f32 %v1610_v62, %v1912_v45 }
 0x105   : > { %v718_v4 = vpop.f32.mrf.mxu1 }
 0x106   : > { %v777_v17 = vpack.c.bf16 %v758_v10, %v757_v9  ;;  %v719_v18 = vadd.f32 %v1912_v45, %v718_v4  ;;  %v763_v32 = vmax.f32 %v727_v30, 0.0 }
 0x107   : > { %v1611_v8 = vpop.f32.mrf.mxu1 }
 0x108   : > { %1633 = vmatmul.mubr.msk.bf16.gmra.mxu1 %vm523_vm0, %v774_v5  ;;  %v761_v23 = vmax.f32 %v719_v18, 0.0  ;;  %v730_v31 = vadd.f32 %v1611_v8, %v1912_v45 }
 0x109   : > { %1636 = vmatprep.mubr.msk.bf16.mxu1 %vm523_vm0, %v775_v63  ;;  %v721_v14 = vpop.f32.mrf.mxu1 }
 0x10a   : > { %v722_v19 = vadd.f32 %v1912_v45, %v721_v14  ;;  %v764_v33 = vmax.f32 %v730_v31, 0.0 }
 0x10c   : > { %v762_v25 = vmax.f32 %v722_v19, 0.0  ;;  %v780_v15 = vpack.c.bf16 %v764_v33, %v763_v32 }
 0x10e   : > { %v779_v29 = vpack.c.bf16 %v762_v25, %v761_v23 }
 0x110   : > { %1637 = vmatmul.mubr.msk.bf16.gmra.mxu1 %vm523_vm0, %v776_v20 }
 0x111   : > { %1640 = vmatprep.mubr.msk.bf16.mxu1 %vm523_vm0, %v777_v17 }
 0x118   : > { %1641 = vmatmul.mubr.msk.bf16.gmra.mxu1 %vm523_vm0, %v778_v2 }
 0x119   : > { %1644 = vmatprep.mubr.msk.bf16.mxu1 %vm523_vm0, %v779_v29 }
 0x120   : > { %1645 = vmatmul.mubr.msk.bf16.gmra.mxu1 %vm523_vm0, %v780_v15 }
 0x1a8   : > { %v1618_v16 = vpop.f32.mrf.mxu1 }
 0x1a9   : > { %v895_v36 = vadd.f32 %v1618_v16, %v1965_v27 }
 0x1aa   : > { %v886_v24 = vpop.f32.mrf.mxu1 }
 0x1ab   : > { %v887_v35 = vadd.f32 %v1965_v27, %v886_v24  ;;  %v1015_v3 = vmax.f32 %v895_v36, 0.0 }
 0x1ac   : > { %v1619_v34 = vpop.f32.mrf.mxu1 }
 0x1ad   : > { %v898_v45 = vadd.f32 %v1619_v34, %v1965_v27  ;;  %v1013_v41 = vmax.f32 %v887_v35, 0.0 }
 0x1ae   : > { %v889_v37 = vpop.f32.mrf.mxu1 }
 0x1af   : > { %v890_v38 = vadd.f32 %v1965_v27, %v889_v37  ;;  %v1016_v39 = vmax.f32 %v898_v45, 0.0 }
 0x1b0   : > { %v1622_v40 = vpop.f32.mrf.mxu1 }
 0x1b1   : > { %v1014_v42 = vmax.f32 %v890_v38, 0.0  ;;  %v1046_v44 = vpack.c.bf16 %v1016_v39, %v1015_v3  ;;  %v911_v49 = vadd.f32 %v1622_v40, %v1965_v27 }
 0x1b2   : > { %v902_v43 = vpop.f32.mrf.mxu1 }
 0x1b3   : > { %v1045_v12 = vpack.c.bf16 %v1014_v42, %v1013_v41  ;;  %v903_v47 = vadd.f32 %v1965_v27, %v902_v43  ;;  %v1019_v56 = vmax.f32 %v911_v49, 0.0 }
 0x1b4   : > { %v1623_v46 = vpop.f32.mrf.mxu1 }
 0x1b5   : > { %v914_v48 = vadd.f32 %v1623_v46, %v1965_v27  ;;  %1652 = vmatprep.mubr.msk.bf16.mxu0 %vm523_vm0, %v1045_v12  ;;  %v1017_v54 = vmax.f32 %v903_v47, 0.0 }
 0x1b6   : > { %v905_v50 = vpop.f32.mrf.mxu1  ;;  %1653 = vmatmul.mubr.msk.bf16.vlgmr.msra.gmra.mxu0 %vm523_vm0, %v1046_v44 }
 0x1b7   : > { %v906_v51 = vadd.f32 %v1965_v27, %v905_v50  ;;  %v1020_v52 = vmax.f32 %v914_v48, 0.0 }
 0x1b8   : > { %v1626_v53 = vpop.f32.mrf.mxu1 }
 0x1b9   : > { %v1018_v55 = vmax.f32 %v906_v51, 0.0  ;;  %v1048_v59 = vpack.c.bf16 %v1020_v52, %v1019_v56  ;;  %v927_v63 = vadd.f32 %v1626_v53, %v1965_v27 }
 0x1ba   : > { %v918_v57 = vpop.f32.mrf.mxu1 }
 0x1bb   : > { %v1047_v58 = vpack.c.bf16 %v1018_v55, %v1017_v54  ;;  %v919_v61 = vadd.f32 %v1965_v27, %v918_v57  ;;  %v1023_v8 = vmax.f32 %v927_v63, 0.0 }
 0x1bc   : > { %v1627_v60 = vpop.f32.mrf.mxu1 }
 0x1bd   : > { %v930_v62 = vadd.f32 %v1627_v60, %v1965_v27  ;;  %1656 = vmatprep.mubr.msk.bf16.mxu0 %vm523_vm0, %v1047_v58  ;;  %v1021_v6 = vmax.f32 %v919_v61, 0.0 }
 0x1be   : > { %v921_v0 = vpop.f32.mrf.mxu1  ;;  %1657 = vmatmul.mubr.msk.bf16.gmra.mxu0 %vm523_vm0, %v1048_v59 }
 0x1bf   : > { %v922_v1 = vadd.f32 %v1965_v27, %v921_v0  ;;  %v1024_v4 = vmax.f32 %v930_v62, 0.0 }
 0x1c0   : > { %v1630_v5 = vpop.f32.mrf.mxu1 }
 0x1c1   : > { %v1022_v7 = vmax.f32 %v922_v1, 0.0  ;;  %v1050_v11 = vpack.c.bf16 %v1024_v4, %v1023_v8  ;;  %v943_v18 = vadd.f32 %v1630_v5, %v1965_v27 }
 0x1c2   : > { %v934_v9 = vpop.f32.mrf.mxu1 }
 0x1c3   : > { %v1049_v10 = vpack.c.bf16 %v1022_v7, %v1021_v6  ;;  %v935_v14 = vadd.f32 %v1965_v27, %v934_v9  ;;  %v1027_v26 = vmax.f32 %v943_v18, 0.0 }
 0x1c4   : > { %v1631_v13 = vpop.f32.mrf.mxu1 }
 0x1c5   : > { %v946_v17 = vadd.f32 %v1631_v13, %v1965_v27  ;;  %1660 = vmatprep.mubr.msk.bf16.mxu0 %vm523_vm0, %v1049_v10  ;;  %v1025_v23 = vmax.f32 %v935_v14, 0.0 }
 0x1c6   : > { %v937_v19 = vpop.f32.mrf.mxu1  ;;  %1661 = vmatmul.mubr.msk.bf16.gmra.mxu0 %vm523_vm0, %v1050_v11 }
 0x1c7   : > { %v938_v20 = vadd.f32 %v1965_v27, %v937_v19  ;;  %v1028_v21 = vmax.f32 %v946_v17, 0.0 }
 0x1c8   : > { %v1634_v22 = vpop.f32.mrf.mxu1 }
 0x1c9   : > { %v1026_v25 = vmax.f32 %v938_v20, 0.0  ;;  %v1052_v2 = vpack.c.bf16 %v1028_v21, %v1027_v26  ;;  %v959_v33 = vadd.f32 %v1634_v22, %v1965_v27 }
 0x1ca   : > { %v950_v28 = vpop.f32.mrf.mxu1 }
 0x1cb   : > { %v1051_v29 = vpack.c.bf16 %v1026_v25, %v1025_v23  ;;  %v951_v31 = vadd.f32 %v1965_v27, %v950_v28  ;;  %v1031_v36 = vmax.f32 %v959_v33, 0.0 }
 0x1cc   : > { %v1635_v30 = vpop.f32.mrf.mxu1 }
 0x1cd   : > { %v962_v32 = vadd.f32 %v1635_v30, %v1965_v27  ;;  %1664 = vmatprep.mubr.msk.bf16.mxu0 %vm523_vm0, %v1051_v29  ;;  %v1029_v35 = vmax.f32 %v951_v31, 0.0 }
 0x1ce   : > { %v953_v15 = vpop.f32.mrf.mxu1  ;;  %1665 = vmatmul.mubr.msk.bf16.gmra.mxu0 %vm523_vm0, %v1052_v2 }
 0x1cf   : > { %v954_v16 = vadd.f32 %v1965_v27, %v953_v15  ;;  %v1032_v24 = vmax.f32 %v962_v32, 0.0 }
 0x1d0   : > { %v1638_v34 = vpop.f32.mrf.mxu1 }
 0x1d1   : > { %v1030_v45 = vmax.f32 %v954_v16, 0.0  ;;  %v1054_v39 = vpack.c.bf16 %v1032_v24, %v1031_v36  ;;  %v975_v3 = vadd.f32 %v1638_v34, %v1965_v27 }
 0x1d2   : > { %v966_v37 = vpop.f32.mrf.mxu1 }
 0x1d3   : > { %v1053_v38 = vpack.c.bf16 %v1030_v45, %v1029_v35  ;;  %v967_v41 = vadd.f32 %v1965_v27, %v966_v37  ;;  %v1035_v49 = vmax.f32 %v975_v3, 0.0 }
 0x1d4   : > { %v1639_v40 = vpop.f32.mrf.mxu1 }
 0x1d5   : > { %v978_v42 = vadd.f32 %v1639_v40, %v1965_v27  ;;  %1668 = vmatprep.mubr.msk.bf16.mxu0 %vm523_vm0, %v1053_v38  ;;  %v1033_v47 = vmax.f32 %v967_v41, 0.0 }
 0x1d6   : > { %v969_v43 = vpop.f32.mrf.mxu1  ;;  %1669 = vmatmul.mubr.msk.bf16.gmra.mxu0 %vm523_vm0, %v1054_v39 }
 0x1d7   : > { %v970_v12 = vadd.f32 %v1965_v27, %v969_v43  ;;  %v1036_v44 = vmax.f32 %v978_v42, 0.0 }
 0x1d8   : > { %v1642_v46 = vpop.f32.mrf.mxu1 }
 0x1d9   : > { %v1034_v48 = vmax.f32 %v970_v12, 0.0  ;;  %v1056_v52 = vpack.c.bf16 %v1036_v44, %v1035_v49  ;;  %v991_v56 = vadd.f32 %v1642_v46, %v1965_v27 }
 0x1da   : > { %v982_v50 = vpop.f32.mrf.mxu1 }
 0x1db   : > { %v1055_v51 = vpack.c.bf16 %v1034_v48, %v1033_v47  ;;  %v983_v54 = vadd.f32 %v1965_v27, %v982_v50  ;;  %v1039_v63 = vmax.f32 %v991_v56, 0.0 }
 0x1dc   : > { %v1643_v53 = vpop.f32.mrf.mxu1 }
 0x1dd   : > { %v994_v55 = vadd.f32 %v1643_v53, %v1965_v27  ;;  %1672 = vmatprep.mubr.msk.bf16.mxu0 %vm523_vm0, %v1055_v51  ;;  %v1037_v61 = vmax.f32 %v983_v54, 0.0 }
 0x1de   : > { %v985_v57 = vpop.f32.mrf.mxu1  ;;  %1673 = vmatmul.mubr.msk.bf16.gmra.mxu0 %vm523_vm0, %v1056_v52 }
 0x1df   : > { %v986_v58 = vadd.f32 %v1965_v27, %v985_v57  ;;  %v1040_v59 = vmax.f32 %v994_v55, 0.0 }
 0x1e0   : > { %v1646_v60 = vpop.f32.mrf.mxu1 }
 0x1e1   : > { %v1038_v62 = vmax.f32 %v986_v58, 0.0  ;;  %v1058_v4 = vpack.c.bf16 %v1040_v59, %v1039_v63  ;;  %v1007_v8 = vadd.f32 %v1646_v60, %v1965_v27 }
 0x1e2   : > { %v998_v0 = vpop.f32.mrf.mxu1 }
 0x1e3   : > { %v1057_v1 = vpack.c.bf16 %v1038_v62, %v1037_v61  ;;  %v999_v6 = vadd.f32 %v1965_v27, %v998_v0  ;;  %v1043_v17 = vmax.f32 %v1007_v8, 0.0 }
 0x1e4   : > { %v1647_v5 = vpop.f32.mrf.mxu1 }
 0x1e5   : > { %v1010_v7 = vadd.f32 %v1647_v5, %v1965_v27  ;;  %1676 = vmatprep.mubr.msk.bf16.mxu0 %vm523_vm0, %v1057_v1  ;;  %v1041_v13 = vmax.f32 %v999_v6, 0.0 }
 0x1e6   : > { %v1001_v9 = vpop.f32.mrf.mxu1  ;;  %1677 = vmatmul.mubr.msk.bf16.gmra.mxu0 %vm523_vm0, %v1058_v4 }
 0x1e7   : > { %v1002_v10 = vadd.f32 %v1965_v27, %v1001_v9  ;;  %v1044_v11 = vmax.f32 %v1010_v7, 0.0 }
 0x1e9   : > { %v1042_v14 = vmax.f32 %v1002_v10, 0.0  ;;  %v1060_v19 = vpack.c.bf16 %v1044_v11, %v1043_v17 }
 0x1eb   : > { %v1059_v18 = vpack.c.bf16 %v1042_v14, %v1041_v13 }
 0x1ed   : > { %1680 = vmatprep.mubr.msk.bf16.mxu0 %vm523_vm0, %v1059_v18 }
 0x1ee   : > { %1681 = vmatmul.mubr.msk.bf16.gmra.mxu0 %vm523_vm0, %v1060_v19 }
 0x276   : > { %v1654_v27 = vpop.f32.mrf.mxu0 }
 0x277   : > { %1288 = vst.msk [vmem:[%s2019_s15 + $0x10] sm:$0xff] %vm523_vm0, %v1654_v27 }
 0x278   : > { %v1159_v20 = vpop.f32.mrf.mxu0 }
 0x279   : > { %1286 = vst.msk [vmem:[%s2019_s15] sm:$0xff] %vm523_vm0, %v1159_v20 }
 0x27a   : > { %v1655_v21 = vpop.f32.mrf.mxu0 }
 0x27b   : > { %1289 = vst.msk [vmem:[%s2019_s15 + $0x18] sm:$0xff] %vm523_vm0, %v1655_v21 }
 0x27c   : > { %v1162_v22 = vpop.f32.mrf.mxu0 }
 0x27d   : > { %1287 = vst.msk [vmem:[%s2019_s15 + $0x8] sm:$0xff] %vm523_vm0, %v1162_v22 }
 0x27e   : > { %v1658_v23 = vpop.f32.mrf.mxu0 }
 0x27f   : > { %1292 = vst.msk [vmem:[%s2019_s15 + $0x30] sm:$0xff] %vm523_vm0, %v1658_v23 }
 0x280   : > { %v1175_v25 = vpop.f32.mrf.mxu0 }
 0x281   : > { %1290 = vst.msk [vmem:[%s2019_s15 + $0x20] sm:$0xff] %vm523_vm0, %v1175_v25 }
 0x282   : > { %v1659_v26 = vpop.f32.mrf.mxu0 }
 0x283   : > { %1293 = vst.msk [vmem:[%s2019_s15 + $0x38] sm:$0xff] %vm523_vm0, %v1659_v26 }
 0x284   : > { %v1178_v28 = vpop.f32.mrf.mxu0 }
 0x285   : > { %1291 = vst.msk [vmem:[%s2019_s15 + $0x28] sm:$0xff] %vm523_vm0, %v1178_v28 }
 0x286   : > { %v1662_v29 = vpop.f32.mrf.mxu0 }
 0x287   : > { %1296 = vst.msk [vmem:[%s2019_s15 + $0x50] sm:$0xff] %vm523_vm0, %v1662_v29 }
 0x288   : > { %v1191_v2 = vpop.f32.mrf.mxu0 }
 0x289   : > { %1294 = vst.msk [vmem:[%s2019_s15 + $0x40] sm:$0xff] %vm523_vm0, %v1191_v2 }
 0x28a   : > { %v1663_v30 = vpop.f32.mrf.mxu0 }
 0x28b   : > { %1297 = vst.msk [vmem:[%s2019_s15 + $0x58] sm:$0xff] %vm523_vm0, %v1663_v30 }
 0x28c   : > { %v1194_v31 = vpop.f32.mrf.mxu0 }
 0x28d   : > { %1295 = vst.msk [vmem:[%s2019_s15 + $0x48] sm:$0xff] %vm523_vm0, %v1194_v31 }
 0x28e   : > { %v1666_v32 = vpop.f32.mrf.mxu0 }
 0x28f   : > { %1300 = vst.msk [vmem:[%s2019_s15 + $0x70] sm:$0xff] %vm523_vm0, %v1666_v32 }
 0x290   : > { %v1207_v33 = vpop.f32.mrf.mxu0 }
 0x291   : > { %1298 = vst.msk [vmem:[%s2019_s15 + $0x60] sm:$0xff] %vm523_vm0, %v1207_v33 }
 0x292   : > { %v1667_v15 = vpop.f32.mrf.mxu0 }
 0x293   : > { %1301 = vst.msk [vmem:[%s2019_s15 + $0x78] sm:$0xff] %vm523_vm0, %v1667_v15 }
 0x294   : > { %v1210_v16 = vpop.f32.mrf.mxu0 }
 0x295   : > { %1299 = vst.msk [vmem:[%s2019_s15 + $0x68] sm:$0xff] %vm523_vm0, %v1210_v16 }
 0x296   : > { %v1670_v24 = vpop.f32.mrf.mxu0 }
 0x297   : > { %1304 = vst.msk [vmem:[%s2019_s15 + $0x90] sm:$0xff] %vm523_vm0, %v1670_v24 }
 0x298   : > { %v1223_v34 = vpop.f32.mrf.mxu0 }
 0x299   : > { %1302 = vst.msk [vmem:[%s2019_s15 + $0x80] sm:$0xff] %vm523_vm0, %v1223_v34 }
 0x29a   : > { %v1671_v35 = vpop.f32.mrf.mxu0 }
 0x29b   : > { %1305 = vst.msk [vmem:[%s2019_s15 + $0x98] sm:$0xff] %vm523_vm0, %v1671_v35 }
 0x29c   : > { %v1226_v45 = vpop.f32.mrf.mxu0 }
 0x29d   : > { %1303 = vst.msk [vmem:[%s2019_s15 + $0x88] sm:$0xff] %vm523_vm0, %v1226_v45 }
 0x29e   : > { %v1674_v36 = vpop.f32.mrf.mxu0 }
 0x29f   : > { %1308 = vst.msk [vmem:[%s2019_s15 + $0xb0] sm:$0xff] %vm523_vm0, %v1674_v36 }
 0x2a0   : > { %v1239_v37 = vpop.f32.mrf.mxu0 }
 0x2a1   : > { %1306 = vst.msk [vmem:[%s2019_s15 + $0xa0] sm:$0xff] %vm523_vm0, %v1239_v37 }
 0x2a2   : > { %v1675_v38 = vpop.f32.mrf.mxu0 }
 0x2a3   : > { %1309 = vst.msk [vmem:[%s2019_s15 + $0xb8] sm:$0xff] %vm523_vm0, %v1675_v38 }
 0x2a4   : > { %v1242_v39 = vpop.f32.mrf.mxu0 }
 0x2a5   : > { %1307 = vst.msk [vmem:[%s2019_s15 + $0xa8] sm:$0xff] %vm523_vm0, %v1242_v39 }
 0x2a6   : > { %v1678_v40 = vpop.f32.mrf.mxu0 }
 0x2a7   : > { %1312 = vst.msk [vmem:[%s2019_s15 + $0xd0] sm:$0xff] %vm523_vm0, %v1678_v40 }
 0x2a8   : > { %v1255_v41 = vpop.f32.mrf.mxu0 }
 0x2a9   : > { %1310 = vst.msk [vmem:[%s2019_s15 + $0xc0] sm:$0xff] %vm523_vm0, %v1255_v41 }
 0x2aa   : > { %v1679_v42 = vpop.f32.mrf.mxu0 }
 0x2ab   : > { %1313 = vst.msk [vmem:[%s2019_s15 + $0xd8] sm:$0xff] %vm523_vm0, %v1679_v42 }
 0x2ac   : > { %v1258_v3 = vpop.f32.mrf.mxu0 }
 0x2ad   : > { %1311 = vst.msk [vmem:[%s2019_s15 + $0xc8] sm:$0xff] %vm523_vm0, %v1258_v3 }
 0x2ae   : > { %v1682_v43 = vpop.f32.mrf.mxu0 }
 0x2af   : > { %1316 = vst.msk [vmem:[%s2019_s15 + $0xf0] sm:$0xff] %vm523_vm0, %v1682_v43 }
 0x2b0   : > { %v1271_v12 = vpop.f32.mrf.mxu0 }
 0x2b1   : > { %1314 = vst.msk [vmem:[%s2019_s15 + $0xe0] sm:$0xff] %vm523_vm0, %v1271_v12 }
 0x2b2   : > { %v1683_v44 = vpop.f32.mrf.mxu0 }
 0x2b3   : > { %1317 = vst.msk [vmem:[%s2019_s15 + $0xf8] sm:$0xff] %vm523_vm0, %v1683_v44 }
 0x2b4   : > { %v1274_v46 = vpop.f32.mrf.mxu0 }
 0x2b5   : > { %1315 = vst.msk [vmem:[%s2019_s15 + $0xe8] sm:$0xff] %vm523_vm0, %v1274_v46 }
 0x2b6 PF: > { %s18_s27 = sadd.s32 1, %s1708_s27  }
 0x2b7   : > { %p15_p4 = scmp.ge.s32.totalorder %s18_s27, 4  }
 0x2b9   :  { %17 = sbr.rel (!%p15_p4) target bundleno = 1 (0x1), region = 82 }

</bundles_post_ra>
